<compile_context>
chip_gen: v6e
topology: v6e:2x2x1
jax: 0.10.0
libtpu: 0.0.40
codegen_flags: <defaults>
</compile_context>

<pallas_src>
import functools

import jax
import jax.numpy as jnp
from jax.experimental import pallas as pl
from jax.experimental.pallas import tpu as pltpu

NUM_COV = 3


def _round_up(n, m):
    return ((n + m - 1) // m) * m


def _direct_conv_kernel(x_ref, kern_ref, out_ref, *, kh, kw, wp, l_out):
    # x_ref:    (C_in, X_cols)        f32  padded sample, spatial flattened (lane axis)
    # kern_ref: (KH*KW, C_out, C_in)  f32  per-sample modulated kernel
    # out_ref:  (C_out, L_out)        f32  lane-dense flat output (wrapper crops)
    #
    # out[:, j] = sum_{dh,dw} W[dh,dw] @ x_flat[:, j + dh*Wp + dw]
    # Valid output positions are j = (ho*stride)*Wp + wo*stride; the remaining
    # columns are harmless garbage that the wrapper slices away.
    acc = jnp.zeros(out_ref.shape, jnp.float32)
    for dh in range(kh):
        for dw in range(kw):
            off = dh * wp + dw                       # static lane offset
            acc = acc + jnp.dot(kern_ref[dh * kw + dw],
                                x_ref[:, off:off + l_out],
                                preferred_element_type=jnp.float32)
    out_ref[...] = acc


def hybrid_conv2d_v2(x, cov, w0, w_stack, stride=1, padding=0):
    """x: (B, C_in, H, W); cov: (B, NUM_COV); w0: (C_out, C_in, KH, KW);
       w_stack: (NUM_COV, C_out, C_in, KH, KW). Returns (B, C_out, Ho, Wo)."""
    B, C_in, H, W = x.shape
    C_out, _, KH, KW = w0.shape

    Hp, Wp = H + 2 * padding, W + 2 * padding
    Ho = (Hp - KH) // stride + 1
    Wo = (Wp - KW) // stride + 1

    # Per-sample modulated kernels, built once in the wrapper (tiny HBM cost).
    # kern[b] = W_0 + sum_r cov[b, r] * W_r   -> (B, C_out, C_in, KH, KW)
    kern = w0[None].astype(jnp.float32) + jnp.tensordot(
        cov.astype(jnp.float32), w_stack.astype(jnp.float32), axes=([1], [0]))
    # Reorder so kern_all[b, dh*KW + dw] is the (C_out, C_in) matrix for tap (dh, dw).
    kern_all = jnp.transpose(kern, (0, 3, 4, 1, 2)).reshape(B, KH * KW, C_out, C_in)

    # Spatially padded input, flattened (contiguous reshape -> no extra traffic
    # beyond the pad itself; NO 9x im2col blow-up).
    x_pad = jnp.pad(x.astype(jnp.float32),
                    ((0, 0), (0, 0), (padding, padding), (padding, padding)))
    x_flat = x_pad.reshape(B, C_in, Hp * Wp)

    # Lane-dense flat output width: covers all valid positions and is a
    # multiple of 128 so the kernel's stores are unmasked.
    Hs = (Ho - 1) * stride + 1
    L_out = _round_up(Hs * Wp, 128)
    max_off = (KH - 1) * Wp + (KW - 1)
    X_cols = max(max_off + L_out, Hp * Wp)
    if X_cols > Hp * Wp:
        x_flat = jnp.pad(x_flat, ((0, 0), (0, 0), (0, X_cols - Hp * Wp)))

    kernel = functools.partial(_direct_conv_kernel, kh=KH, kw=KW, wp=Wp, l_out=L_out)

    cost = pl.CostEstimate(
        flops=2 * B * KH * KW * C_out * C_in * L_out,
        transcendentals=0,
        bytes_accessed=4 * (B * C_in * X_cols
                            + B * KH * KW * C_out * C_in
                            + B * C_out * L_out),
    )

    out_flat = pl.pallas_call(
        kernel,
        out_shape=jax.ShapeDtypeStruct((B, C_out, L_out), jnp.float32),
        grid_spec=pltpu.PrefetchScalarGridSpec(
            num_scalar_prefetch=0,
            grid=(B,),                                   # one step per sample
            in_specs=[
                # whole padded sample (a few KiB) resident for its grid step
                pl.BlockSpec((None, C_in, X_cols), lambda b: (b, 0, 0)),
                # that sample's modulated kernel
                pl.BlockSpec((None, KH * KW, C_out, C_in), lambda b: (b, 0, 0, 0)),
            ],
            out_specs=pl.BlockSpec((None, C_out, L_out), lambda b: (b, 0, 0)),
        ),
        compiler_params=pltpu.CompilerParams(
            # Disjoint per-sample blocks: safe to shard across v7x's two TCs.
            dimension_semantics=("parallel",),
        ),
        cost_estimate=cost,
    )(x_flat, kern_all)

    # Crop the flat padded output back to NCHW (tiny copy: a few KiB/sample).
    out = out_flat[:, :, :Hs * Wp].reshape(B, C_out, Hs, Wp)
    out = out[:, :, ::stride, 0:(Wo - 1) * stride + 1:stride]
    return out  # (B, C_out, Ho, Wo)


def _reference(x, cov, w0, w_stack, stride, padding):
    """Pure-JAX reference mirroring the PyTorch forward loop."""
    dn = jax.lax.conv_dimension_numbers(x.shape, w0.shape, ('NCHW', 'OIHW', 'NCHW'))
    outs = []
    for i in range(x.shape[0]):
        kern = w0 + jnp.tensordot(cov[i], w_stack, axes=([0], [0]))
        out = jax.lax.conv_general_dilated(
            x[i:i + 1], kern, window_strides=(stride, stride),
            padding=[(padding, padding), (padding, padding)],
            dimension_numbers=dn)
        outs.append(out)
    return jnp.concatenate(outs, axis=0)


if __name__ == "__main__":
    # Small shapes consistent with the module's forward.
    B, C_in, C_out, H, W = 2, 4, 8, 16, 16
    KH = KW = 3
    stride, padding = 1, 1

    key = jax.random.PRNGKey(0)
    kx, kc, k0, kr = jax.random.split(key, 4)

    x = jax.random.normal(kx, (B, C_in, H, W), dtype=jnp.float32)
    cov = jax.random.normal(kc, (B, NUM_COV), dtype=jnp.float32)

    # Kaiming normal, mode='fan_out', nonlinearity='relu':
    # std = sqrt(2 / (C_out * KH * KW))
    std = (2.0 / (C_out * KH * KW)) ** 0.5
    w0 = std * jax.random.normal(k0, (C_out, C_in, KH, KW), dtype=jnp.float32)
    w_stack = std * jax.random.normal(kr, (NUM_COV, C_out, C_in, KH, KW),
                                      dtype=jnp.float32)

    out = hybrid_conv2d_v2(x, cov, w0, w_stack, stride=stride, padding=padding)
    out = jax.block_until_ready(out)

    ref = _reference(x, cov, w0, w_stack, stride, padding)
    assert out.shape == ref.shape == (B, C_out, H, W), (out.shape, ref.shape)
    assert jnp.allclose(out, ref, atol=1e-4, rtol=1e-4), "mismatch vs reference conv"

    print("KERNEL_OK")
</pallas_src>

<mosaic_0001>
module attributes {stable_mosaic.version = 11 : i64} {
  func.func @_direct_conv_kernel(%arg0: i32, %arg1: memref<1x4x422xf32, #tpu.memory_space<vmem>>, %arg2: memref<1x9x8x4xf32, #tpu.memory_space<vmem>>, %arg3: memref<1x8x384xf32, #tpu.memory_space<vmem>>) attributes {dimension_semantics = [#tpu.dimension_semantics<parallel>], iteration_bounds = array<i64: 2>, scalar_prefetch = 0 : i64, scratch_operands = 0 : i64, tpu.core_type = #tpu.core_type<tc>, window_params = [{transform_indices = @transform_0, window_bounds = array<i64: 1, 4, 422>}, {transform_indices = @transform_1, window_bounds = array<i64: 1, 9, 8, 4>}, {transform_indices = @transform_2, window_bounds = array<i64: 1, 8, 384>}]} {
    %cst = arith.constant 0.000000e+00 : f32
    %0 = vector.broadcast %cst : f32 to vector<8x384xf32>
    %c0 = arith.constant 0 : index
    %c0_0 = arith.constant 0 : index
    %c0_1 = arith.constant 0 : index
    %c0_2 = arith.constant 0 : index
    %1 = vector.load %arg2[%c0, %c0_0, %c0_1, %c0_2] : memref<1x9x8x4xf32, #tpu.memory_space<vmem>>, vector<1x1x8x4xf32>
    %2 = vector.shape_cast %1 : vector<1x1x8x4xf32> to vector<8x4xf32>
    %c0_3 = arith.constant 0 : index
    %c0_4 = arith.constant 0 : index
    %c0_5 = arith.constant 0 : index
    %3 = vector.load %arg1[%c0_3, %c0_4, %c0_5] : memref<1x4x422xf32, #tpu.memory_space<vmem>>, vector<1x4x384xf32>
    %4 = vector.shape_cast %3 : vector<1x4x384xf32> to vector<4x384xf32>
    %cst_6 = arith.constant dense<0.000000e+00> : vector<8x384xf32>
    %5 = tpu.matmul %2, %4, %cst_6 {dimension_numbers = #tpu.dot_dimension_numbers<[1], [0], [0], [1], [0, 0, 1, 1], [], []>} : vector<8x4xf32>, vector<4x384xf32>, vector<8x384xf32> -> vector<8x384xf32>
    %6 = arith.addf %0, %5 : vector<8x384xf32>
    %c0_7 = arith.constant 0 : index
    %c1 = arith.constant 1 : index
    %c0_8 = arith.constant 0 : index
    %c0_9 = arith.constant 0 : index
    %7 = vector.load %arg2[%c0_7, %c1, %c0_8, %c0_9] : memref<1x9x8x4xf32, #tpu.memory_space<vmem>>, vector<1x1x8x4xf32>
    %8 = vector.shape_cast %7 : vector<1x1x8x4xf32> to vector<8x4xf32>
    %c0_10 = arith.constant 0 : index
    %c0_11 = arith.constant 0 : index
    %c1_12 = arith.constant 1 : index
    %9 = vector.load %arg1[%c0_10, %c0_11, %c1_12] : memref<1x4x422xf32, #tpu.memory_space<vmem>>, vector<1x4x384xf32>
    %10 = vector.shape_cast %9 : vector<1x4x384xf32> to vector<4x384xf32>
    %cst_13 = arith.constant dense<0.000000e+00> : vector<8x384xf32>
    %11 = tpu.matmul %8, %10, %cst_13 {dimension_numbers = #tpu.dot_dimension_numbers<[1], [0], [0], [1], [0, 0, 1, 1], [], []>} : vector<8x4xf32>, vector<4x384xf32>, vector<8x384xf32> -> vector<8x384xf32>
    %12 = arith.addf %6, %11 : vector<8x384xf32>
    %c0_14 = arith.constant 0 : index
    %c2 = arith.constant 2 : index
    %c0_15 = arith.constant 0 : index
    %c0_16 = arith.constant 0 : index
    %13 = vector.load %arg2[%c0_14, %c2, %c0_15, %c0_16] : memref<1x9x8x4xf32, #tpu.memory_space<vmem>>, vector<1x1x8x4xf32>
    %14 = vector.shape_cast %13 : vector<1x1x8x4xf32> to vector<8x4xf32>
    %c0_17 = arith.constant 0 : index
    %c0_18 = arith.constant 0 : index
    %c2_19 = arith.constant 2 : index
    %15 = vector.load %arg1[%c0_17, %c0_18, %c2_19] : memref<1x4x422xf32, #tpu.memory_space<vmem>>, vector<1x4x384xf32>
    %16 = vector.shape_cast %15 : vector<1x4x384xf32> to vector<4x384xf32>
    %cst_20 = arith.constant dense<0.000000e+00> : vector<8x384xf32>
    %17 = tpu.matmul %14, %16, %cst_20 {dimension_numbers = #tpu.dot_dimension_numbers<[1], [0], [0], [1], [0, 0, 1, 1], [], []>} : vector<8x4xf32>, vector<4x384xf32>, vector<8x384xf32> -> vector<8x384xf32>
    %18 = arith.addf %12, %17 : vector<8x384xf32>
    %c0_21 = arith.constant 0 : index
    %c3 = arith.constant 3 : index
    %c0_22 = arith.constant 0 : index
    %c0_23 = arith.constant 0 : index
    %19 = vector.load %arg2[%c0_21, %c3, %c0_22, %c0_23] : memref<1x9x8x4xf32, #tpu.memory_space<vmem>>, vector<1x1x8x4xf32>
    %20 = vector.shape_cast %19 : vector<1x1x8x4xf32> to vector<8x4xf32>
    %c0_24 = arith.constant 0 : index
    %c0_25 = arith.constant 0 : index
    %c18 = arith.constant 18 : index
    %21 = vector.load %arg1[%c0_24, %c0_25, %c18] : memref<1x4x422xf32, #tpu.memory_space<vmem>>, vector<1x4x384xf32>
    %22 = vector.shape_cast %21 : vector<1x4x384xf32> to vector<4x384xf32>
    %cst_26 = arith.constant dense<0.000000e+00> : vector<8x384xf32>
    %23 = tpu.matmul %20, %22, %cst_26 {dimension_numbers = #tpu.dot_dimension_numbers<[1], [0], [0], [1], [0, 0, 1, 1], [], []>} : vector<8x4xf32>, vector<4x384xf32>, vector<8x384xf32> -> vector<8x384xf32>
    %24 = arith.addf %18, %23 : vector<8x384xf32>
    %c0_27 = arith.constant 0 : index
    %c4 = arith.constant 4 : index
    %c0_28 = arith.constant 0 : index
    %c0_29 = arith.constant 0 : index
    %25 = vector.load %arg2[%c0_27, %c4, %c0_28, %c0_29] : memref<1x9x8x4xf32, #tpu.memory_space<vmem>>, vector<1x1x8x4xf32>
    %26 = vector.shape_cast %25 : vector<1x1x8x4xf32> to vector<8x4xf32>
    %c0_30 = arith.constant 0 : index
    %c0_31 = arith.constant 0 : index
    %c19 = arith.constant 19 : index
    %27 = vector.load %arg1[%c0_30, %c0_31, %c19] : memref<1x4x422xf32, #tpu.memory_space<vmem>>, vector<1x4x384xf32>
    %28 = vector.shape_cast %27 : vector<1x4x384xf32> to vector<4x384xf32>
    %cst_32 = arith.constant dense<0.000000e+00> : vector<8x384xf32>
    %29 = tpu.matmul %26, %28, %cst_32 {dimension_numbers = #tpu.dot_dimension_numbers<[1], [0], [0], [1], [0, 0, 1, 1], [], []>} : vector<8x4xf32>, vector<4x384xf32>, vector<8x384xf32> -> vector<8x384xf32>
    %30 = arith.addf %24, %29 : vector<8x384xf32>
    %c0_33 = arith.constant 0 : index
    %c5 = arith.constant 5 : index
    %c0_34 = arith.constant 0 : index
    %c0_35 = arith.constant 0 : index
    %31 = vector.load %arg2[%c0_33, %c5, %c0_34, %c0_35] : memref<1x9x8x4xf32, #tpu.memory_space<vmem>>, vector<1x1x8x4xf32>
    %32 = vector.shape_cast %31 : vector<1x1x8x4xf32> to vector<8x4xf32>
    %c0_36 = arith.constant 0 : index
    %c0_37 = arith.constant 0 : index
    %c20 = arith.constant 20 : index
    %33 = vector.load %arg1[%c0_36, %c0_37, %c20] : memref<1x4x422xf32, #tpu.memory_space<vmem>>, vector<1x4x384xf32>
    %34 = vector.shape_cast %33 : vector<1x4x384xf32> to vector<4x384xf32>
    %cst_38 = arith.constant dense<0.000000e+00> : vector<8x384xf32>
    %35 = tpu.matmul %32, %34, %cst_38 {dimension_numbers = #tpu.dot_dimension_numbers<[1], [0], [0], [1], [0, 0, 1, 1], [], []>} : vector<8x4xf32>, vector<4x384xf32>, vector<8x384xf32> -> vector<8x384xf32>
    %36 = arith.addf %30, %35 : vector<8x384xf32>
    %c0_39 = arith.constant 0 : index
    %c6 = arith.constant 6 : index
    %c0_40 = arith.constant 0 : index
    %c0_41 = arith.constant 0 : index
    %37 = vector.load %arg2[%c0_39, %c6, %c0_40, %c0_41] : memref<1x9x8x4xf32, #tpu.memory_space<vmem>>, vector<1x1x8x4xf32>
    %38 = vector.shape_cast %37 : vector<1x1x8x4xf32> to vector<8x4xf32>
    %c0_42 = arith.constant 0 : index
    %c0_43 = arith.constant 0 : index
    %c36 = arith.constant 36 : index
    %39 = vector.load %arg1[%c0_42, %c0_43, %c36] : memref<1x4x422xf32, #tpu.memory_space<vmem>>, vector<1x4x384xf32>
    %40 = vector.shape_cast %39 : vector<1x4x384xf32> to vector<4x384xf32>
    %cst_44 = arith.constant dense<0.000000e+00> : vector<8x384xf32>
    %41 = tpu.matmul %38, %40, %cst_44 {dimension_numbers = #tpu.dot_dimension_numbers<[1], [0], [0], [1], [0, 0, 1, 1], [], []>} : vector<8x4xf32>, vector<4x384xf32>, vector<8x384xf32> -> vector<8x384xf32>
    %42 = arith.addf %36, %41 : vector<8x384xf32>
    %c0_45 = arith.constant 0 : index
    %c7 = arith.constant 7 : index
    %c0_46 = arith.constant 0 : index
    %c0_47 = arith.constant 0 : index
    %43 = vector.load %arg2[%c0_45, %c7, %c0_46, %c0_47] : memref<1x9x8x4xf32, #tpu.memory_space<vmem>>, vector<1x1x8x4xf32>
    %44 = vector.shape_cast %43 : vector<1x1x8x4xf32> to vector<8x4xf32>
    %c0_48 = arith.constant 0 : index
    %c0_49 = arith.constant 0 : index
    %c37 = arith.constant 37 : index
    %45 = vector.load %arg1[%c0_48, %c0_49, %c37] : memref<1x4x422xf32, #tpu.memory_space<vmem>>, vector<1x4x384xf32>
    %46 = vector.shape_cast %45 : vector<1x4x384xf32> to vector<4x384xf32>
    %cst_50 = arith.constant dense<0.000000e+00> : vector<8x384xf32>
    %47 = tpu.matmul %44, %46, %cst_50 {dimension_numbers = #tpu.dot_dimension_numbers<[1], [0], [0], [1], [0, 0, 1, 1], [], []>} : vector<8x4xf32>, vector<4x384xf32>, vector<8x384xf32> -> vector<8x384xf32>
    %48 = arith.addf %42, %47 : vector<8x384xf32>
    %c0_51 = arith.constant 0 : index
    %c8 = arith.constant 8 : index
    %c0_52 = arith.constant 0 : index
    %c0_53 = arith.constant 0 : index
    %49 = vector.load %arg2[%c0_51, %c8, %c0_52, %c0_53] : memref<1x9x8x4xf32, #tpu.memory_space<vmem>>, vector<1x1x8x4xf32>
    %50 = vector.shape_cast %49 : vector<1x1x8x4xf32> to vector<8x4xf32>
    %c0_54 = arith.constant 0 : index
    %c0_55 = arith.constant 0 : index
    %c38 = arith.constant 38 : index
    %51 = vector.load %arg1[%c0_54, %c0_55, %c38] : memref<1x4x422xf32, #tpu.memory_space<vmem>>, vector<1x4x384xf32>
    %52 = vector.shape_cast %51 : vector<1x4x384xf32> to vector<4x384xf32>
    %cst_56 = arith.constant dense<0.000000e+00> : vector<8x384xf32>
    %53 = tpu.matmul %50, %52, %cst_56 {dimension_numbers = #tpu.dot_dimension_numbers<[1], [0], [0], [1], [0, 0, 1, 1], [], []>} : vector<8x4xf32>, vector<4x384xf32>, vector<8x384xf32> -> vector<8x384xf32>
    %54 = arith.addf %48, %53 : vector<8x384xf32>
    %c0_57 = arith.constant 0 : index
    %c0_58 = arith.constant 0 : index
    %c0_59 = arith.constant 0 : index
    %55 = vector.load %arg3[%c0_57, %c0_58, %c0_59] : memref<1x8x384xf32, #tpu.memory_space<vmem>>, vector<1x8x384xf32>
    %56 = vector.shape_cast %55 : vector<1x8x384xf32> to vector<8x384xf32>
    %57 = vector.shape_cast %54 : vector<8x384xf32> to vector<1x8x384xf32>
    tpu.vector_store %arg3[%c0_57, %c0_58, %c0_59], %57 {strides = array<i32>} : memref<1x8x384xf32, #tpu.memory_space<vmem>>, vector<1x8x384xf32>,
    return
  }
  func.func @transform_0(%arg0: i32) -> (i32, i32, i32) {
    %c0_i32 = arith.constant 0 : i32
    %c0_i32_0 = arith.constant 0 : i32
    %c0_i32_1 = arith.constant 0 : i32
    return %arg0, %c0_i32, %c0_i32_0 : i32, i32, i32
  }
  func.func @transform_1(%arg0: i32) -> (i32, i32, i32, i32) {
    %c0_i32 = arith.constant 0 : i32
    %c0_i32_0 = arith.constant 0 : i32
    %c0_i32_1 = arith.constant 0 : i32
    %c0_i32_2 = arith.constant 0 : i32
    return %arg0, %c0_i32, %c0_i32_0, %c0_i32_1 : i32, i32, i32, i32
  }
  func.func @transform_2(%arg0: i32) -> (i32, i32, i32) {
    %c0_i32 = arith.constant 0 : i32
    %c0_i32_0 = arith.constant 0 : i32
    %c0_i32_1 = arith.constant 0 : i32
    return %arg0, %c0_i32, %c0_i32_0 : i32, i32, i32
  }
}

</mosaic_0001>

<bundles_post_ra>
// kernel: tpu_custom_call.1
= control target key start
LH: loop header
LB: loop body
LE: loop exit
PB: predicated region body
PF: predicated region fallthrough
CT: control target
= control target key end

     0   :  { %7 = vsyncpa [#allocation3], 0  ;;  %s2273_s0 = inlined_call_operand.vmem [shape: f32[2,4,422], index: 0, kind: input, shape index: {}]   ;;  %s2274_s1 = inlined_call_operand.vmem [shape: f32[2,9,8,4], index: 1, kind: input, shape index: {}]   ;;  %s2275_s2 = inlined_call_operand.hbm [shape: f32[2,8,384], index: 2, kind: output, shape index: {}]  }
   0x1   :  { %9 = vsyncpa [#allocation3 + $0x1], 0  ;;  %s2056_s9 = smov 0   ;;  %s2058_s10 = smov 0  }
   0x2   :  { %s2060_s11 = smov 0   ;;  %s2062_s12 = smov 0  }
   0x3 LB: > { %s2077_s13 = sadd.s32 4294967295, %s2028_s12   ;;  %s1787_s14 = sadd.s32 4294967294, %s2028_s12   ;;  %s2028_s12 = sphi %s2062_s12, %s2281_s12   ;;  %s2024_s11 = sphi %s2060_s11, %s2280_s11   ;;  %s2020_s10 = sphi %s2058_s10, %s2279_s10   ;;  %s2016_s9 = sphi %s2056_s9, %s2278_s9  }
   0x4   : > { %s2081_s15 = sadd.s32 1, %s2028_s12   ;;  %s74_s16 = sadd.s32 1, %s2024_s11 }
   0x5   : > { %s71_s17 = ssub.s32 %s2028_s12, %s2081_s15  ;;  %p84_p0 = scmp.ne.s32.totalorder %s2024_s11, %s2020_s10 }
   0x6   : > { %p72_p1 = scmp.eq.s32.totalorder %s71_s17, 0  ;;  %p85_p2 = scmp.eq.s32.totalorder %s2077_s13, 1 }
   0x7   : > { %p90_p3 = scmp.ne.s32.totalorder %s2020_s10, %s2016_s9  ;;  %p91_p4 = scmp.eq.s32.totalorder %s1787_s14, 1 }
   0x8   : > { %s2092_s18 = scalar_select %p72_p1, %s2024_s11, %s74_s16  }
   0x9   : > { %p2094_p5 = por %p85_p2, %p84_p0  ;;  %p2098_p6 = por %p91_p4, %p90_p3 }
   0xa   : > { %p1790_p7 = scmp.ge.s32.totalorder %s2028_s12, 1  ;;  %p125_p8 = scmp.lt.s32.totalorder %s2028_s12, 3 }
   0xc   : > { %p126_p9 = pnand %p1790_p7, %p125_p8 }
   0xd   : > { %p152_p10 = scmp.lt.s32.totalorder (!%p126_p9), %s2077_s13, 1  ;;  %s2032_s26 = smov (!%p126_p9), 127  }
   0xe   : > { %129 = sbr.rel (%p126_p9) target bundleno = 411 (0x19b), region = 28  ;;  %s2033_s27 = smov (!%p126_p9), 126  }
   0xf   : > { %s2034_s28 = smov (!%p126_p9), 110   ;;  %s2035_s29 = smov (!%p126_p9), 109  }
  0x10   : > { %s2036_s30 = smov (!%p126_p9), 108   ;;  %s2037_s3 = smov (!%p126_p9), 92  }
  0x11   : > { %s2038_s4 = smov (!%p126_p9), 91   ;;  %s2039_s5 = smov (!%p126_p9), 90  }
  0x12   : > { %s149_s16 = sand.u32 (!%p126_p9), 1, %s2020_s10  }
  0x13   : > { %v2030_v0 = vmov 0.0   ;;  %s2108_s21 = scalar_select %p152_p10, %s2077_s13, 1  ;;  %vm2031_vm0 = vmmov 0   ;;  %vm180_vm1 = vcmask 1039360   ;;  %vm188_vm2 = vcmask 1043456  }
  0x14   : > { %259 = vmatprep.mubr.f32.mxu0 %v2030_v0  ;;  %1869 = vmatprep.subr.mxu1 %v2030_v0  ;;  %vm184_vm3 = vcmask 31744   ;;  %vm503_vm4 = vcmask 1031168   ;;  %vm676_vm5 = vcmask 900096   ;;  %vm849_vm6 = vcmask 891904   ;;  %s1914_s17 = smul.u32 24, %s149_s16 }
  0x15   : > { %1871 = vmatprep.mubr.msk.f32.mxu1 %vm2031_vm0, %v2030_v0  ;;  %s1850_s22 = sshll.u32 %s2108_s21, 4  ;;  %s1915_s6 = smul.u32 72, %s2108_s21  ;;  %vm1022_vm7 = vcmask 883712   ;;  %vm1195_vm8 = vcmask 752640   ;;  %vm1368_vm9 = vcmask 744448   ;;  %vm1541_vm10 = vcmask 736256  }
  0x16   : > { %s2116_s25 = scalar_lea.vmem %s2273_s0, %s1850_s22  ;;  %s1916_s21 = smul.u32 384, %s2077_s13 }
  0x17   : > { %v167_v1 = vld [vmem:[%s2116_s25 + $0x8] sm:$0xff]  ;;  %v2120_v2 = vld [vmem:[%s2116_s25] sm:$0xff]  ;;  %s2136_s14 = scalar_lea.vmem %s2274_s1, %s1915_s6  ;;  %s151_s22 = scalar_lea.vmem [#allocation2], %s1914_s17 }
  0x18   : > { %176 = vrot.lane.b32.xlu0 %v167_v1, %s2032_s26  ;;  %172 = vrot.lane.b32.xlu1 %v2120_v2, %s2032_s26  ;;  %v170_v3 = vcombine.high %v2120_v2, %v2120_v2  ;;  %v171_v4 = vcombine.high %v167_v1, %v167_v1  ;;  %v1794_v11 = vld [vmem:[%s2136_s14 + $0x8] sm:$0xff]  ;;  %v162_v17 = vld [vmem:[%s2136_s14] sm:$0xff]  ;;  %s1716_s23 = sshll.u32 %s151_s22, 4  ;;  %s1702_s13 = scalar_lea.sflag [#allocation3], %s149_s16  ;;  %s1717_s23 = int_to_ptr.vmem [resolvable:$true] %s1716_s23 }
  0x19   : > { %v164_v16 = vld [vmem:[%s2116_s25 + $0x8] sm:$0xf]  ;;  %v1805_v22 = vld [vmem:[%s2136_s14 + $0x10] sm:$0xff]  ;;  %v1811_v28 = vld [vmem:[%s2136_s14 + $0x18] sm:$0xff] }
  0x1a   : > { %v1817_v36 = vld [vmem:[%s2136_s14 + $0x20] sm:$0xff]  ;;  %v1823_v44 = vld [vmem:[%s2136_s14 + $0x28] sm:$0xff]  ;;  %v1829_v52 = vld [vmem:[%s2136_s14 + $0x30] sm:$0xff] }
  0x1b   : > { %v1835_v60 = vld [vmem:[%s2136_s14 + $0x38] sm:$0xff] }
  0x1c   : > { %499 = vrot.lane.b32.xlu1 %v167_v1, %s2033_s27  ;;  %174 = vrot.lane.b32.xlu0 %v170_v3, %s2032_s26 }
  0x20   : > { %178 = vrot.lane.b32.xlu1 %v171_v4, %s2032_s26  ;;  %497 = vrot.lane.b32.xlu0 %v170_v3, %s2033_s27  ;;  %s1714_s26 = scalar_lea.hbm %s2275_s2, %s1916_s21 }
  0x24   : > { %501 = vrot.lane.b32.xlu1 %v171_v4, %s2033_s27  ;;  %495 = vrot.lane.b32.xlu0 %v2120_v2, %s2033_s27  ;;  %s1968_s27 = scalar_lea.vmem %s1717_s23, 384 }
  0x25   : > { %p1969_p11 = scmp.ne.s32.totalorder %s1717_s23, %s1968_s27 }
  0x27   : > { %p1970_p12 = pnand %p1969_p11, %p2094_p5 }
  0x28   : > { %672 = vrot.lane.b32.xlu1 %v167_v1, %s2034_s28  ;;  %670 = vrot.lane.b32.xlu0 %v170_v3, %s2034_s28 }
  0x29   : > { %p1971_p13 = pneg %p1970_p12 }
  0x2c   : > { %674 = vrot.lane.b32.xlu1 %v171_v4, %s2034_s28  ;;  %668 = vrot.lane.b32.xlu0 %v2120_v2, %s2034_s28  ;;  %s2040_s28 = smov [#allocation2]  }
  0x30   : > { %845 = vrot.lane.b32.xlu1 %v167_v1, %s2035_s29  ;;  %843 = vrot.lane.b32.xlu0 %v170_v3, %s2035_s29 }
  0x34   : > { %847 = vrot.lane.b32.xlu1 %v171_v4, %s2035_s29  ;;  %841 = vrot.lane.b32.xlu0 %v2120_v2, %s2035_s29  ;;  %s1972_s29 = sshll.u32 %s2040_s28, 4  ;;  %s1973_s29 = int_to_ptr.vmem [resolvable:$false] %s1972_s29 }
  0x35   : > { %p1975_p0 = scmp.lt.s32.totalorder %s1717_s23, %s1973_s29 }
  0x38   : > { %1018 = vrot.lane.b32.xlu1 %v167_v1, %s2036_s30  ;;  %1016 = vrot.lane.b32.xlu0 %v170_v3, %s2036_s30 }
  0x3c   : > { %1020 = vrot.lane.b32.xlu1 %v171_v4, %s2036_s30  ;;  %1014 = vrot.lane.b32.xlu0 %v2120_v2, %s2036_s30  ;;  %s1974_s30 = scalar_lea.vmem %s1973_s29, 768 }
  0x3d   : > { %p1976_p1 = scmp.lt.s32.totalorder %s1974_s30, %s1968_s27 }
  0x3f   : > { %p1977_p2 = por %p1976_p1, %p1975_p0 }
  0x40   : > { %1191 = vrot.lane.b32.xlu1 %v167_v1, %s2037_s3  ;;  %1189 = vrot.lane.b32.xlu0 %v170_v3, %s2037_s3 }
  0x41   : > { %p1978_p3 = pnand %p1977_p2, %p1971_p13 }
  0x44   : > { %1193 = vrot.lane.b32.xlu1 %v171_v4, %s2037_s3  ;;  %1187 = vrot.lane.b32.xlu0 %v2120_v2, %s2037_s3 }
  0x48   : > { %1364 = vrot.lane.b32.xlu1 %v167_v1, %s2038_s4  ;;  %1362 = vrot.lane.b32.xlu0 %v170_v3, %s2038_s4 }
  0x4c   : > { %1366 = vrot.lane.b32.xlu1 %v171_v4, %s2038_s4  ;;  %1360 = vrot.lane.b32.xlu0 %v2120_v2, %s2038_s4 }
  0x50   : > { %1537 = vrot.lane.b32.xlu1 %v167_v1, %s2039_s5  ;;  %1535 = vrot.lane.b32.xlu0 %v170_v3, %s2039_s5 }
  0x54   : > { %1539 = vrot.lane.b32.xlu1 %v171_v4, %s2039_s5  ;;  %1533 = vrot.lane.b32.xlu0 %v2120_v2, %s2039_s5 }
  0x8a   : > { %v177_v5 = vpop.permute.xlu0 %176  ;;  %v173_v6 = vpop.permute.xlu1 %172 }
  0x8e   : > { %v500_v7 = vpop.permute.xlu1 %499  ;;  %v175_v8 = vpop.permute.xlu0 %174 }
  0x8f   : > { %v182_v9 = vsel %vm180_vm1, %v175_v8, %v177_v5  ;;  %v181_v10 = vsel %vm180_vm1, %v173_v6, %v175_v8 }
  0x90   : > { %1795 = vmatprep.subr.msk.mxu0 %vm188_vm2, %v182_v9 }
  0x91   : > { %1796 = vmatpush1.msk.msra.mxu0 %vm188_vm2, %v181_v10 }
  0x92   : > { %v179_v12 = vpop.permute.xlu1 %178  ;;  %1800 = vmatprep.subr.msk.mxu0 %vm188_vm2, %v170_v3  ;;  %v498_v13 = vpop.permute.xlu0 %497  ;;  %1797 = vmatmul.mubr.msk.f32.vlgmr.msra.gmra.mxu0 %vm184_vm3, %v1794_v11 }
  0x93   : > { %v505_v14 = vsel %vm503_vm4, %v498_v13, %v500_v7  ;;  %1801 = vmatpush1.msk.msra.mxu0 %vm188_vm2, %v2120_v2  ;;  %v183_v15 = vsel %vm180_vm1, %v177_v5, %v179_v12  ;;  %410 = vmatprep.mubr.f32.mxu0 %v2030_v0  ;;  %v1841_v5 = vld [vmem:[%s2136_s14 + $0x40] sm:$0xff] }
  0x94   : > { %1870 = vmatpush3.msk.msra.mxu1 %vm188_vm2, %v183_v15  ;;  %1806 = vmatprep.subr.msk.mxu0 %vm188_vm2, %v505_v14 }
  0x95   : > { %1872 = vmatmul.mubr.msk.f32.vlgmr.msra.gmra.mxu1 %vm184_vm3, %v1794_v11  ;;  %1874 = vmatprep.subr.mxu1 %v2030_v0 }
  0x96   : > { %v502_v18 = vpop.permute.xlu1 %501  ;;  %v496_v19 = vpop.permute.xlu0 %495  ;;  %1875 = vmatpush3.msk.msra.mxu1 %vm188_vm2, %v164_v16  ;;  %1802 = vmatmul.mubr.msk.f32.vlgmr.msra.gmra.mxu0 %vm184_vm3, %v162_v17 }
  0x97   : > { %v506_v20 = vsel %vm503_vm4, %v500_v7, %v502_v18  ;;  %v504_v21 = vsel %vm503_vm4, %v496_v19, %v498_v13  ;;  %1876 = vmatprep.mubr.msk.f32.mxu1 %vm2031_vm0, %v2030_v0  ;;  %1879 = vmatprep.subr.mxu1 %v2030_v0 }
  0x98   : > { %1807 = vmatpush1.msk.msra.mxu0 %vm188_vm2, %v504_v21  ;;  %580 = vmatprep.mubr.f32.mxu0 %v2030_v0 }
  0x99   : > { %1877 = vmatmul.mubr.msk.f32.vlgmr.msra.gmra.mxu1 %vm184_vm3, %v162_v17 }
  0x9a   : > { %1880 = vmatpush3.msk.msra.mxu1 %vm188_vm2, %v506_v20  ;;  %v673_v23 = vpop.permute.xlu1 %672  ;;  %v671_v24 = vpop.permute.xlu0 %670  ;;  %1881 = vmatprep.mubr.msk.f32.mxu1 %vm2031_vm0, %v2030_v0 }
  0x9b   : > { %v678_v25 = vsel %vm676_vm5, %v671_v24, %v673_v23  ;;  %1884 = vmatprep.subr.mxu1 %v2030_v0  ;;  %1808 = vmatmul.mubr.msk.f32.vlgmr.msra.gmra.mxu0 %vm184_vm3, %v1805_v22 }
  0x9c   : > { %1812 = vmatprep.subr.msk.mxu0 %vm188_vm2, %v678_v25  ;;  %753 = vmatprep.mubr.f32.mxu0 %v2030_v0 }
  0x9d   : > { %1882 = vmatmul.mubr.msk.f32.vlgmr.msra.gmra.mxu1 %vm184_vm3, %v1805_v22 }
  0x9e   : > { %v675_v26 = vpop.permute.xlu1 %674  ;;  %v669_v27 = vpop.permute.xlu0 %668  ;;  %1886 = vmatprep.mubr.msk.f32.mxu1 %vm2031_vm0, %v2030_v0 }
  0x9f   : > { %v679_v29 = vsel %vm676_vm5, %v673_v23, %v675_v26  ;;  %v677_v30 = vsel %vm676_vm5, %v669_v27, %v671_v24 }
  0xa0   : > { %1813 = vmatpush1.msk.msra.mxu0 %vm188_vm2, %v677_v30  ;;  %1885 = vmatpush3.msk.msra.mxu1 %vm188_vm2, %v679_v29 }
  0xa1   : > { %1889 = vmatprep.subr.mxu1 %v2030_v0  ;;  %1814 = vmatmul.mubr.msk.f32.vlgmr.msra.gmra.mxu0 %vm184_vm3, %v1811_v28 }
  0xa2   : > { %v846_v31 = vpop.permute.xlu1 %845  ;;  %v844_v32 = vpop.permute.xlu0 %843  ;;  %1887 = vmatmul.mubr.msk.f32.vlgmr.msra.gmra.mxu1 %vm184_vm3, %v1811_v28  ;;  %926 = vmatprep.mubr.f32.mxu0 %v2030_v0 }
  0xa3   : > { %v851_v33 = vsel %vm849_vm6, %v844_v32, %v846_v31  ;;  %1891 = vmatprep.mubr.msk.f32.mxu1 %vm2031_vm0, %v2030_v0 }
  0xa4   : > { %1818 = vmatprep.subr.msk.mxu0 %vm188_vm2, %v851_v33 }
  0xa6   : > { %v848_v34 = vpop.permute.xlu1 %847  ;;  %v842_v35 = vpop.permute.xlu0 %841 }
  0xa7   : > { %v852_v37 = vsel %vm849_vm6, %v846_v31, %v848_v34  ;;  %v850_v38 = vsel %vm849_vm6, %v842_v35, %v844_v32 }
  0xa8   : > { %1819 = vmatpush1.msk.msra.mxu0 %vm188_vm2, %v850_v38  ;;  %1890 = vmatpush3.msk.msra.mxu1 %vm188_vm2, %v852_v37 }
  0xa9   : > { %1820 = vmatmul.mubr.msk.f32.vlgmr.msra.gmra.mxu0 %vm184_vm3, %v1817_v36  ;;  %1894 = vmatprep.subr.mxu1 %v2030_v0 }
  0xaa   : > { %v1019_v39 = vpop.permute.xlu1 %1018  ;;  %v1017_v40 = vpop.permute.xlu0 %1016  ;;  %1892 = vmatmul.mubr.msk.f32.vlgmr.msra.gmra.mxu1 %vm184_vm3, %v1817_v36  ;;  %1099 = vmatprep.mubr.f32.mxu0 %v2030_v0 }
  0xab   : > { %v1024_v41 = vsel %vm1022_vm7, %v1017_v40, %v1019_v39  ;;  %1896 = vmatprep.mubr.msk.f32.mxu1 %vm2031_vm0, %v2030_v0 }
  0xac   : > { %1824 = vmatprep.subr.msk.mxu0 %vm188_vm2, %v1024_v41 }
  0xae   : > { %v1021_v42 = vpop.permute.xlu1 %1020  ;;  %v1015_v43 = vpop.permute.xlu0 %1014 }
  0xaf   : > { %v1025_v45 = vsel %vm1022_vm7, %v1019_v39, %v1021_v42  ;;  %v1023_v46 = vsel %vm1022_vm7, %v1015_v43, %v1017_v40 }
  0xb0   : > { %1825 = vmatpush1.msk.msra.mxu0 %vm188_vm2, %v1023_v46  ;;  %1895 = vmatpush3.msk.msra.mxu1 %vm188_vm2, %v1025_v45 }
  0xb1   : > { %1826 = vmatmul.mubr.msk.f32.vlgmr.msra.gmra.mxu0 %vm184_vm3, %v1823_v44  ;;  %1897 = vmatmul.mubr.msk.f32.vlgmr.msra.gmra.mxu1 %vm184_vm3, %v1823_v44 }
  0xb2   : > { %v1192_v47 = vpop.permute.xlu1 %1191  ;;  %v1190_v48 = vpop.permute.xlu0 %1189  ;;  %1899 = vmatprep.subr.mxu1 %v2030_v0  ;;  %1272 = vmatprep.mubr.f32.mxu0 %v2030_v0 }
  0xb3   : > { %v1197_v49 = vsel %vm1195_vm8, %v1190_v48, %v1192_v47  ;;  %1901 = vmatprep.mubr.msk.f32.mxu1 %vm2031_vm0, %v2030_v0 }
  0xb4   : > { %1830 = vmatprep.subr.msk.mxu0 %vm188_vm2, %v1197_v49 }
  0xb6   : > { %v1194_v50 = vpop.permute.xlu1 %1193  ;;  %v1188_v51 = vpop.permute.xlu0 %1187 }
  0xb7   : > { %v1198_v53 = vsel %vm1195_vm8, %v1192_v47, %v1194_v50  ;;  %v1196_v54 = vsel %vm1195_vm8, %v1188_v51, %v1190_v48 }
  0xb8   : > { %1831 = vmatpush1.msk.msra.mxu0 %vm188_vm2, %v1196_v54  ;;  %1900 = vmatpush3.msk.msra.mxu1 %vm188_vm2, %v1198_v53 }
  0xb9   : > { %1832 = vmatmul.mubr.msk.f32.vlgmr.msra.gmra.mxu0 %vm184_vm3, %v1829_v52  ;;  %1902 = vmatmul.mubr.msk.f32.vlgmr.msra.gmra.mxu1 %vm184_vm3, %v1829_v52 }
  0xba   : > { %v1365_v55 = vpop.permute.xlu1 %1364  ;;  %v1363_v56 = vpop.permute.xlu0 %1362  ;;  %1904 = vmatprep.subr.mxu1 %v2030_v0  ;;  %1445 = vmatprep.mubr.f32.mxu0 %v2030_v0 }
  0xbb   : > { %v1370_v57 = vsel %vm1368_vm9, %v1363_v56, %v1365_v55  ;;  %1906 = vmatprep.mubr.msk.f32.mxu1 %vm2031_vm0, %v2030_v0 }
  0xbc   : > { %1836 = vmatprep.subr.msk.mxu0 %vm188_vm2, %v1370_v57 }
  0xbe   : > { %v1367_v58 = vpop.permute.xlu1 %1366  ;;  %v1361_v59 = vpop.permute.xlu0 %1360 }
  0xbf   : > { %v1371_v61 = vsel %vm1368_vm9, %v1365_v55, %v1367_v58  ;;  %v1369_v62 = vsel %vm1368_vm9, %v1361_v59, %v1363_v56 }
  0xc0   : > { %1837 = vmatpush1.msk.msra.mxu0 %vm188_vm2, %v1369_v62  ;;  %1905 = vmatpush3.msk.msra.mxu1 %vm188_vm2, %v1371_v61 }
  0xc1   : > { %1838 = vmatmul.mubr.msk.f32.vlgmr.msra.gmra.mxu0 %vm184_vm3, %v1835_v60  ;;  %1907 = vmatmul.mubr.msk.f32.vlgmr.msra.gmra.mxu1 %vm184_vm3, %v1835_v60 }
  0xc2   : > { %v1538_v63 = vpop.permute.xlu1 %1537  ;;  %v1536_v1 = vpop.permute.xlu0 %1535  ;;  %1909 = vmatprep.subr.mxu1 %v2030_v0  ;;  %1618 = vmatprep.mubr.f32.mxu0 %v2030_v0 }
  0xc3   : > { %v1543_v2 = vsel %vm1541_vm10, %v1536_v1, %v1538_v63  ;;  %1911 = vmatprep.mubr.msk.f32.mxu1 %vm2031_vm0, %v2030_v0 }
  0xc4   : > { %1842 = vmatprep.subr.msk.mxu0 %vm188_vm2, %v1543_v2 }
  0xc6   : > { %v1540_v3 = vpop.permute.xlu1 %1539  ;;  %v1534_v4 = vpop.permute.xlu0 %1533 }
  0xc7   : > { %v1544_v6 = vsel %vm1541_vm10, %v1538_v63, %v1540_v3  ;;  %v1542_v7 = vsel %vm1541_vm10, %v1534_v4, %v1536_v1 }
  0xc8   : > { %1843 = vmatpush1.msk.msra.mxu0 %vm188_vm2, %v1542_v7  ;;  %1910 = vmatpush3.msk.msra.mxu1 %vm188_vm2, %v1544_v6 }
  0xc9   : > { %1844 = vmatmul.mubr.msk.f32.vlgmr.msra.gmra.mxu0 %vm184_vm3, %v1841_v5  ;;  %1912 = vmatmul.mubr.msk.f32.vlgmr.msra.gmra.mxu1 %vm184_vm3, %v1841_v5 }
 0x152   : > { %v261_v8 = vpop.f32.mrf.mxu0 }
 0x154   : > { %v263_v9 = vpop.f32.mrf.mxu0 }
 0x155   : > { %v332_v10 = vpop.f32.mrf.mxu1 }
 0x156   : > { %v412_v11 = vpop.f32.mrf.mxu0 }
 0x157   : > { %v1873_v0 = vpop.f32.mrf.mxu1  ;;  %v413_v29 = vadd.f32 %v412_v11, %v261_v8 }
 0x158   : > { %v414_v13 = vpop.f32.mrf.mxu0 }
 0x159   : > { %v483_v12 = vpop.f32.mrf.mxu1  ;;  %v415_v32 = vadd.f32 %v414_v13, %v263_v9 }
 0x15a   : > { %v484_v30 = vadd.f32 %v483_v12, %v332_v10 }
 0x15b   : > { %v1878_v14 = vpop.f32.mrf.mxu1  ;;  %v582_v16 = vpop.f32.mrf.mxu0 }
 0x15c   : > { %v657_v33 = vadd.f32 %v582_v16, %v413_v29 }
 0x15d   : > { %v653_v15 = vpop.f32.mrf.mxu1  ;;  %v584_v19 = vpop.f32.mrf.mxu0 }
 0x15e   : > { %v659_v34 = vadd.f32 %v653_v15, %v484_v30  ;;  %v658_v38 = vadd.f32 %v584_v19, %v415_v32 }
 0x15f   : > { %v1883_v17 = vpop.f32.mrf.mxu1 }
 0x161   : > { %v755_v21 = vpop.f32.mrf.mxu0 }
 0x162   : > { %v826_v18 = vpop.f32.mrf.mxu1  ;;  %v830_v39 = vadd.f32 %v755_v21, %v657_v33 }
 0x163   : > { %v757_v23 = vpop.f32.mrf.mxu0  ;;  %v832_v40 = vadd.f32 %v826_v18, %v659_v34 }
 0x164   : > { %v1888_v20 = vpop.f32.mrf.mxu1  ;;  %v831_v42 = vadd.f32 %v757_v23, %v658_v38 }
 0x169   : > { %v928_v25 = vpop.f32.mrf.mxu0 }
 0x16a   : > { %v999_v22 = vpop.f32.mrf.mxu1  ;;  %v1003_v43 = vadd.f32 %v928_v25, %v830_v39 }
 0x16b   : > { %v930_v27 = vpop.f32.mrf.mxu0  ;;  %v1005_v44 = vadd.f32 %v999_v22, %v832_v40 }
 0x16c   : > { %v1893_v24 = vpop.f32.mrf.mxu1  ;;  %v1004_v49 = vadd.f32 %v930_v27, %v831_v42 }
 0x171   : > { %v1172_v26 = vpop.f32.mrf.mxu1  ;;  %v1101_v31 = vpop.f32.mrf.mxu0 }
 0x172   : > { %v1176_v50 = vadd.f32 %v1101_v31, %v1003_v43  ;;  %v1178_v51 = vadd.f32 %v1172_v26, %v1005_v44 }
 0x173   : > { %v1898_v28 = vpop.f32.mrf.mxu1  ;;  %v1103_v36 = vpop.f32.mrf.mxu0 }
 0x174   : > { %v1177_v52 = vadd.f32 %v1103_v36, %v1004_v49 }
 0x179   : > { %v1345_v35 = vpop.f32.mrf.mxu1  ;;  %v1274_v41 = vpop.f32.mrf.mxu0 }
 0x17a   : > { %v1349_v53 = vadd.f32 %v1274_v41, %v1176_v50  ;;  %v1351_v54 = vadd.f32 %v1345_v35, %v1178_v51 }
 0x17b   : > { %v1903_v37 = vpop.f32.mrf.mxu1  ;;  %v1276_v45 = vpop.f32.mrf.mxu0 }
 0x17c   : > { %v1350_v56 = vadd.f32 %v1276_v45, %v1177_v52 }
 0x181   : > { %v1518_v46 = vpop.f32.mrf.mxu1  ;;  %v1447_v47 = vpop.f32.mrf.mxu0 }
 0x182   : > { %v1522_v57 = vadd.f32 %v1447_v47, %v1349_v53  ;;  %v1524_v58 = vadd.f32 %v1518_v46, %v1351_v54 }
 0x183   : > { %v1908_v48 = vpop.f32.mrf.mxu1  ;;  %v1449_v55 = vpop.f32.mrf.mxu0 }
 0x184   : > { %v1523_v61 = vadd.f32 %v1449_v55, %v1350_v56 }
 0x189   : > { %v1620_v59 = vpop.f32.mrf.mxu0  ;;  %v1691_v60 = vpop.f32.mrf.mxu1 }
 0x18a   : > { %v1695_v62 = vadd.f32 %v1620_v59, %v1522_v57  ;;  %v1697_v63 = vadd.f32 %v1691_v60, %v1524_v58 }
 0x18b   : > { %v1622_v1 = vpop.f32.mrf.mxu0  ;;  %v1913_v2 = vpop.f32.mrf.mxu1 }
 0x18c   : > { %1698 = vst [vmem:[%s151_s22] sm:$0xff] %v1695_v62  ;;  %1700 = vst [vmem:[%s151_s22 + $0x10] sm:$0xff] %v1697_v63  ;;  %v1696_v3 = vadd.f32 %v1622_v1, %v1523_v61 }
 0x18e   : > { %1699 = vst [vmem:[%s151_s22 + $0x8] sm:$0xff] %v1696_v3 }
 0x18f   : > { %1981 = shalt.err (!%p1978_p3)
}
 0x190   : > { %s1982_s3 = scalar_lea.hbm %s1714_s26, 384  ;;  %s1986_s6 = scalar_lea.hbm %s2275_s2, 768 }
 0x191   : > { %p1983_p4 = scmp.ne.s32.totalorder %s1714_s26, %s1982_s3  ;;  %p1987_p9 = scmp.lt.s32.totalorder %s1714_s26, %s2275_s2 }
 0x192   : > { %p1988_p10 = scmp.lt.s32.totalorder %s1986_s6, %s1982_s3 }
 0x193   : > { %p1984_p7 = pnand %p1983_p4, %p2094_p5 }
 0x194   : > { %p1989_p11 = por %p1988_p10, %p1987_p9 }
 0x195   : > { %p1985_p8 = pneg %p1984_p7 }
 0x197   : > { %p1990_p12 = pnand %p1989_p11, %p1985_p8 }
 0x199   : > { %1993 = shalt.err (!%p1990_p12)
}
 0x19a   : > { %1917 = dma.vmem_to_hbm [thread:$0]  (%p2094_p5), %s1717_s23, 384, %s1714_s26, %s1702_s13  }
 0x19b PF: > { %p1923_p13 = scmp.ge.s32.totalorder %s2028_s12, 2  ;;  %s1728_s14 = sand.u32 1, %s2016_s9  }
 0x19c   : > { %s1729_s16 = scalar_lea.sflag [#allocation3], %s1728_s14 }
 0x19d   : > { %p1920_p0 = pnand %p1923_p13, %p2098_p6 }
 0x19f   : > { %p1921_p1 = pneg %p1920_p0 }
 0x1a1   : > { %2011 = dma.done.wait (%p1921_p1), %s1729_s16, 384  }
 0x1a2   : > { %2013 = vsyncadd (%p1921_p1), %s1729_s16, 4294966912  ;;  %p12_p2 = scmp.ge.s32.totalorder %s2081_s15, 4   ;;  %s2278_s9 = smov %s2020_s10 }
 0x1a3   : > { %s2279_s10 = smov %s2024_s11  ;;  %s2280_s11 = smov %s2092_s18 }
 0x1a4   : > { %s2281_s12 = smov %s2081_s15  ;;  %14 = sbr.rel (!%p12_p2) target bundleno = 3 (0x3), region = 74 }
 0x1a9   :  { %1734 = vsyncpa [#allocation3], 1 }
 0x1aa   :  { %1736 = vsyncpa [#allocation3 + $0x1], 1 }

</bundles_post_ra>
